<compile_context>
chip_gen: v6e
topology: v6e:2x2x1
jax: 0.10.0
libtpu: 0.0.40
codegen_flags: <defaults>
</compile_context>

<pallas_src>
import functools
import math

import jax
import jax.numpy as jnp
from jax.experimental import pallas as pl
from jax.experimental.pallas import tpu as pltpu


# ---------------------------------------------------------------------------
# Helpers: generation-aware VMEM budget, tiling, single-buffer feature probe
# ---------------------------------------------------------------------------

_MIB = 1024 * 1024


@functools.lru_cache(maxsize=None)
def _vmem_limit_bytes():
    """Scoped-VMEM limit: 64 MiB on 128-MiB parts (v5e/v6e); ~48 MiB on v7x
    (64 MiB physical) so the compiler keeps headroom for internal scratch."""
    try:
        cap = int(pltpu.get_tpu_info().vmem_capacity_bytes)
    except Exception:
        return 48 * _MIB
    if cap >= 100 * _MIB:
        return 64 * _MIB
    return max(32 * _MIB, min(48 * _MIB, cap - 16 * _MIB))


def _pick_row_tile(n):
    """Largest of (512, 256, 128) dividing n, else n itself (single block)."""
    # TODO(synk): ragged trailing tiles for huge, non-128-divisible row counts.
    for t in (512, 256, 128):
        if n % t == 0:
            return t
    return n


def _copy_probe_kernel(x_ref, o_ref):
    o_ref[...] = x_ref[...]


@functools.lru_cache(maxsize=None)
def _single_buffer_supported():
    """Feature-probe pl.Buffered(1): single-buffer grid-invariant operands
    (saves one full weight copy of VMEM).  Falls back to default double
    buffering if this Pallas build rejects it."""
    try:
        fn = pl.pallas_call(
            _copy_probe_kernel,
            grid=(2,),
            in_specs=[pl.BlockSpec((8, 128), lambda i: (0, 0),
                                   pipeline_mode=pl.Buffered(1))],
            out_specs=pl.BlockSpec((8, 128), lambda i: (i, 0)),
            out_shape=jax.ShapeDtypeStruct((16, 128), jnp.float32),
        )
        jax.block_until_ready(fn(jnp.zeros((8, 128), jnp.float32)))
        return True
    except Exception:
        return False


def _resident_spec(shape, index_map):
    """BlockSpec for a grid-invariant (weight / bias) operand."""
    if _single_buffer_supported():
        return pl.BlockSpec(shape, index_map, pipeline_mode=pl.Buffered(1))
    return pl.BlockSpec(shape, index_map)


# ---------------------------------------------------------------------------
# Kernel A: fused Q/K/V projection (row-tiled over B*L)
# ---------------------------------------------------------------------------

def _qkv_proj_kernel(xq_ref, xk_ref, xv_ref,
                     wq_ref, wk_ref, wv_ref,
                     bq_ref, bk_ref, bv_ref,
                     qo_ref, ko_ref, vo_ref, *, q_scale):
    # bf16 MXU operands, f32 accumulation; bias add + q scaling in f32.
    q = jnp.dot(xq_ref[...].astype(jnp.bfloat16), wq_ref[...],
                preferred_element_type=jnp.float32)
    qo_ref[...] = ((q + bq_ref[...]) * q_scale).astype(qo_ref.dtype)
    k = jnp.dot(xk_ref[...].astype(jnp.bfloat16), wk_ref[...],
                preferred_element_type=jnp.float32)
    ko_ref[...] = (k + bk_ref[...]).astype(ko_ref.dtype)
    v = jnp.dot(xv_ref[...].astype(jnp.bfloat16), wv_ref[...],
                preferred_element_type=jnp.float32)
    vo_ref[...] = (v + bv_ref[...]).astype(vo_ref.dtype)


def _qkv_proj_fused_kernel(x_ref, w_ref, b_ref,
                           qo_ref, ko_ref, vo_ref, *, q_scale, d_model):
    # Self-attention fast path: one weight-stationary [tm, 3*d_model] matmul,
    # one input DMA stream, lane-dense result sliced into q/k/v stores.
    y = jnp.dot(x_ref[...].astype(jnp.bfloat16), w_ref[...],
                preferred_element_type=jnp.float32) + b_ref[...]
    qo_ref[...] = (y[:, :d_model] * q_scale).astype(qo_ref.dtype)
    ko_ref[...] = y[:, d_model:2 * d_model].astype(ko_ref.dtype)
    vo_ref[...] = y[:, 2 * d_model:].astype(vo_ref.dtype)


def qkv_projection(xq, xk, xv, wq, wk, wv, bq, bk, bv, q_scale,
                   *, out_dtype=jnp.bfloat16):
    """xq/xk/xv: [N, d_model] f32; wq/wk/wv: bf16 -> (q*scale, k, v), each
    [N, d_model] in `out_dtype` (bf16 halves the HBM store + later load)."""
    n, d_model = xq.shape
    tm = _pick_row_tile(n)
    grid = (pl.cdiv(n, tm),)
    row_spec = pl.BlockSpec((tm, d_model), lambda i: (i, 0))
    out_sds = jax.ShapeDtypeStruct((n, d_model), out_dtype)
    cparams = pltpu.CompilerParams(
        dimension_semantics=("parallel",),
        vmem_limit_bytes=_vmem_limit_bytes())

    if xq is xk and xk is xv:
        w_cat = jnp.concatenate([wq, wk, wv], axis=1)            # (d, 3d) bf16
        b_cat = jnp.concatenate([bq, bk, bv], axis=0).reshape(1, 3 * d_model)
        kernel = functools.partial(_qkv_proj_fused_kernel,
                                   q_scale=q_scale, d_model=d_model)
        return pl.pallas_call(
            kernel,
            grid=grid,
            in_specs=[row_spec,
                      _resident_spec((d_model, 3 * d_model), lambda i: (0, 0)),
                      _resident_spec((1, 3 * d_model), lambda i: (0, 0))],
            out_specs=[row_spec, row_spec, row_spec],
            out_shape=(out_sds, out_sds, out_sds),
            compiler_params=cparams,
        )(xq, w_cat, b_cat)

    kernel = functools.partial(_qkv_proj_kernel, q_scale=q_scale)
    w_spec = _resident_spec((d_model, d_model), lambda i: (0, 0))
    b_spec = _resident_spec((1, d_model), lambda i: (0, 0))
    return pl.pallas_call(
        kernel,
        grid=grid,
        in_specs=[row_spec, row_spec, row_spec,
                  w_spec, w_spec, w_spec,
                  b_spec, b_spec, b_spec],
        out_specs=[row_spec, row_spec, row_spec],
        out_shape=(out_sds, out_sds, out_sds),
        compiler_params=cparams,
    )(xq, xk, xv, wq, wk, wv,
      bq.reshape(1, d_model), bk.reshape(1, d_model), bv.reshape(1, d_model))


# ---------------------------------------------------------------------------
# Kernel B: attention + head-concat + output projection
# ---------------------------------------------------------------------------

def _attention_kernel(q_ref, k_ref, v_ref, wo_ref, bo_ref, o_ref, ctx_ref,
                      *, n_head):
    """Full-KV attention for one (batch, q-row-tile) grid step."""
    q = q_ref[0]                     # (tq, d_model) bf16, pre-scaled by 1/sqrt(d_head)
    k = k_ref[0]                     # (L,  d_model) bf16
    v = v_ref[0]                     # (L,  d_model) bf16
    d_model = q.shape[-1]
    d_head = d_model // n_head

    # TODO(synk): optional attention mask (masked_fill(mask == 0, -10000)) is not
    # wired; the module's forward default is mask=None.  Dropout == identity here.
    # Static head loop over lane slices (d_head is usually not 128-aligned, so a
    # dynamic pl.ds on the lane dim is avoided); every per-head result lands in the
    # VMEM scratch `ctx_ref`, so no (tq, d_model) accumulator value is carried live
    # across the unrolled iterations.
    for h in range(n_head):
        lo = h * d_head
        s = jax.lax.dot_general(                      # q_h @ k_h^T, no K transpose
            q[:, lo:lo + d_head], k[:, lo:lo + d_head],
            (((1,), (1,)), ((), ())), preferred_element_type=jnp.float32)
        s = s - jnp.max(s, axis=-1, keepdims=True)    # f32 max-subtraction
        p = jnp.exp(s)
        denom = jnp.sum(p, axis=-1, keepdims=True)
        ctx = jnp.dot(p.astype(jnp.bfloat16), v[:, lo:lo + d_head],
                      preferred_element_type=jnp.float32)
        # Deferred softmax normalization: scale the (tq, d_head) context instead
        # of the (tq, L) probability tile.
        ctx_ref[:, lo:lo + d_head] = ctx * pl.reciprocal(denom, approx=False)

    # Head concat + W_o folded into ONE full-depth (d_model-contraction) MXU matmul.
    out = jnp.dot(ctx_ref[...].astype(jnp.bfloat16), wo_ref[...],
                  preferred_element_type=jnp.float32)
    o_ref[0] = (out + bo_ref[...]).astype(o_ref.dtype)


def _flash_attention_kernel(q_ref, k_ref, v_ref, wo_ref, bo_ref, o_ref,
                            m_ref, l_ref, acc_ref, *, n_head):
    """kv-tiled online-softmax attention; grid = (B, L//tq, L//tk), kv axis last."""
    ki = pl.program_id(2)

    @pl.when(ki == 0)
    def _():
        m_ref[...] = jnp.full_like(m_ref, -jnp.inf)
        l_ref[...] = jnp.zeros_like(l_ref)
        acc_ref[...] = jnp.zeros_like(acc_ref)

    q = q_ref[0]                     # (tq, d_model) bf16, pre-scaled
    k = k_ref[0]                     # (tk, d_model) bf16
    v = v_ref[0]
    d_model = q.shape[-1]
    d_head = d_model // n_head

    for h in range(n_head):
        lo = h * d_head
        s = jax.lax.dot_general(
            q[:, lo:lo + d_head], k[:, lo:lo + d_head],
            (((1,), (1,)), ((), ())), preferred_element_type=jnp.float32)   # (tq, tk)
        m_prev = m_ref[:, h:h + 1]
        m_new = jnp.maximum(m_prev, jnp.max(s, axis=-1, keepdims=True))
        alpha = jnp.exp(m_prev - m_new)
        p = jnp.exp(s - m_new)
        l_ref[:, h:h + 1] = alpha * l_ref[:, h:h + 1] + jnp.sum(p, axis=-1,
                                                                keepdims=True)
        acc_ref[:, lo:lo + d_head] = (
            alpha * acc_ref[:, lo:lo + d_head]
            + jnp.dot(p.astype(jnp.bfloat16), v[:, lo:lo + d_head],
                      preferred_element_type=jnp.float32))
        m_ref[:, h:h + 1] = m_new

    @pl.when(ki == pl.num_programs(2) - 1)
    def _():
        # Deferred normalization, then concat + W_o as one full-depth matmul.
        for h in range(n_head):
            lo = h * d_head
            acc_ref[:, lo:lo + d_head] = (
                acc_ref[:, lo:lo + d_head]
                * pl.reciprocal(l_ref[:, h:h + 1], approx=False))
        out = jnp.dot(acc_ref[...].astype(jnp.bfloat16), wo_ref[...],
                      preferred_element_type=jnp.float32)
        o_ref[0] = (out + bo_ref[...]).astype(o_ref.dtype)


def attention_output(qp, kp, vp, w_o, b_o, n_head, *, out_dtype,
                     impl="auto", q_block=None, kv_block=None):
    """qp/kp/vp: [B, L, d_model] bf16 (qp pre-scaled) -> [B, L, d_model]."""
    B, L, d_model = qp.shape
    vmem_limit = _vmem_limit_bytes()

    # Advisory cost hint (identical totals for both paths).
    cost = pl.CostEstimate(
        flops=B * (4 * L * L * d_model + 2 * L * d_model * d_model),
        transcendentals=B * n_head * L * L,
        bytes_accessed=(2 * 3 * B * L * d_model + 2 * d_model * d_model
                        + 4 * d_model + 4 * B * L * d_model))

    if q_block is not None and L % q_block == 0:
        tq = q_block
    else:
        tq = _pick_row_tile(L)

    # kv-tiled flash path: required at much smaller L on v7x (64 MiB VMEM);
    # needs a 128-divisible sequence length for clean kv tiles.
    if impl == "flash":
        use_flash = True
    elif impl == "full":
        use_flash = False
    else:
        flash_min_len = 1024 if vmem_limit <= 48 * _MIB else 2048
        use_flash = L >= flash_min_len
    use_flash = use_flash and (L % 128 == 0)

    b_o2 = b_o.reshape(1, d_model)
    out_shape = jax.ShapeDtypeStruct((B, L, d_model), out_dtype)

    if use_flash:
        if kv_block is not None and L % kv_block == 0:
            tk = kv_block
        else:
            tk = 512 if L % 512 == 0 else (256 if L % 256 == 0 else 128)
        kernel = functools.partial(_flash_attention_kernel, n_head=n_head)
        return pl.pallas_call(
            kernel,
            grid=(B, L // tq, L // tk),
            in_specs=[pl.BlockSpec((1, tq, d_model), lambda b, i, j: (b, i, 0)),
                      pl.BlockSpec((1, tk, d_model), lambda b, i, j: (b, j, 0)),
                      pl.BlockSpec((1, tk, d_model), lambda b, i, j: (b, j, 0)),
                      _resident_spec((d_model, d_model), lambda b, i, j: (0, 0)),
                      _resident_spec((1, d_model), lambda b, i, j: (0, 0))],
            out_specs=pl.BlockSpec((1, tq, d_model), lambda b, i, j: (b, i, 0)),
            out_shape=out_shape,
            scratch_shapes=[pltpu.VMEM((tq, n_head), jnp.float32),   # running max
                            pltpu.VMEM((tq, n_head), jnp.float32),   # running denom
                            pltpu.VMEM((tq, d_model), jnp.float32)], # running context
            compiler_params=pltpu.CompilerParams(
                dimension_semantics=("parallel", "parallel", "arbitrary"),
                vmem_limit_bytes=vmem_limit),
            cost_estimate=cost,
        )(qp, kp, vp, w_o, b_o2)

    kernel = functools.partial(_attention_kernel, n_head=n_head)
    return pl.pallas_call(
        kernel,
        grid=(B, L // tq),
        in_specs=[pl.BlockSpec((1, tq, d_model), lambda b, i: (b, i, 0)),
                  pl.BlockSpec((1, L, d_model), lambda b, i: (b, 0, 0)),
                  pl.BlockSpec((1, L, d_model), lambda b, i: (b, 0, 0)),
                  _resident_spec((d_model, d_model), lambda b, i: (0, 0)),
                  _resident_spec((1, d_model), lambda b, i: (0, 0))],
        out_specs=pl.BlockSpec((1, tq, d_model), lambda b, i: (b, i, 0)),
        out_shape=out_shape,
        scratch_shapes=[pltpu.VMEM((tq, d_model), jnp.float32)],     # concat context
        compiler_params=pltpu.CompilerParams(
            dimension_semantics=("parallel", "parallel"),
            vmem_limit_bytes=vmem_limit),
        cost_estimate=cost,
    )(qp, kp, vp, w_o, b_o2)


# ---------------------------------------------------------------------------
# Module wrapper
# ---------------------------------------------------------------------------

def init_mha_params(key, d_model):
    """Deterministic init.  Weights stored as [d_in, d_out] (= PyTorch W^T).
    Note: the PyTorch module builds a fresh nn.Linear inside concat(); we model
    it as a fixed output-projection parameter (w_o / b_o)."""
    keys = jax.random.split(key, 8)
    scale = 1.0 / math.sqrt(d_model)

    def w(kk):
        return jax.random.uniform(kk, (d_model, d_model), jnp.float32, -scale, scale)

    def b(kk):
        return jax.random.uniform(kk, (d_model,), jnp.float32, -scale, scale)

    return {
        "w_q": w(keys[0]), "b_q": b(keys[1]),
        "w_k": w(keys[2]), "b_k": b(keys[3]),
        "w_v": w(keys[4]), "b_v": b(keys[5]),
        "w_o": w(keys[6]), "b_o": b(keys[7]),
    }


def multi_head_attention(params, q, k, v, n_head, *,
                         attention_impl="auto", q_block=None, kv_block=None):
    B, L, d_model = q.shape
    d_head = d_model // n_head
    n = B * L
    q_scale = 1.0 / math.sqrt(d_head)

    # Weights pre-cast to bf16 once: native MXU dtype, halves resident-weight
    # VMEM and weight DMA.  Biases stay f32 (added to the f32 accumulators).
    wq = params["w_q"].astype(jnp.bfloat16)
    wk = params["w_k"].astype(jnp.bfloat16)
    wv = params["w_v"].astype(jnp.bfloat16)
    wo = params["w_o"].astype(jnp.bfloat16)

    if (q is k) and (k is v):
        x = q.reshape(n, d_model)          # self-attention: single fused QKV matmul
        qp, kp, vp = qkv_projection(x, x, x, wq, wk, wv,
                                    params["b_q"], params["b_k"], params["b_v"],
                                    q_scale)
    else:
        qp, kp, vp = qkv_projection(q.reshape(n, d_model), k.reshape(n, d_model),
                                    v.reshape(n, d_model), wq, wk, wv,
                                    params["b_q"], params["b_k"], params["b_v"],
                                    q_scale)

    # Free reshapes only — head split/concat happens inside the attention kernel,
    # so no XLA transpose kernels are emitted.
    qp = qp.reshape(B, L, d_model)
    kp = kp.reshape(B, L, d_model)
    vp = vp.reshape(B, L, d_model)

    # dropout: identity at inference time (p=0.1 only affects training).
    return attention_output(qp, kp, vp, wo, params["b_o"], n_head,
                            out_dtype=q.dtype, impl=attention_impl,
                            q_block=q_block, kv_block=kv_block)


# ---------------------------------------------------------------------------
# Pure-JAX reference (correctness check)
# ---------------------------------------------------------------------------

def reference_mha(params, q, k, v, n_head):
    B, L, d_model = q.shape
    d_head = d_model // n_head

    def lin(x, w, bias):
        return x @ w + bias

    qp = lin(q, params["w_q"], params["b_q"])
    kp = lin(k, params["w_k"], params["b_k"])
    vp = lin(v, params["w_v"], params["b_v"])

    def split(t):
        return t.reshape(B, L, n_head, d_head).transpose(0, 2, 1, 3)

    qh, kh, vh = split(qp), split(kp), split(vp)
    score = jnp.einsum("bhld,bhmd->bhlm", qh, kh) / math.sqrt(d_head)
    score = jax.nn.softmax(score, axis=-1)
    out = jnp.einsum("bhlm,bhmd->bhld", score, vh)
    out = out.transpose(0, 2, 1, 3).reshape(B, L, d_model)
    return lin(out, params["w_o"], params["b_o"])


# ---------------------------------------------------------------------------

if __name__ == "__main__":
    B, L, d_model, n_head = 2, 8, 32, 4

    key = jax.random.PRNGKey(0)
    kq, kk, kv, kp = jax.random.split(key, 4)
    q = jax.random.normal(kq, (B, L, d_model), jnp.float32)
    k = jax.random.normal(kk, (B, L, d_model), jnp.float32)
    v = jax.random.normal(kv, (B, L, d_model), jnp.float32)
    params = init_mha_params(kp, d_model)

    # bf16 MXU operands + bf16 q/k/v intermediates vs. an all-f32 reference:
    # expected max deviation is a few 1e-2; a genuine kernel bug would be O(1).
    tol = dict(atol=5e-2, rtol=5e-2)

    # 1) Cross-attention: separate Q/K/V projections + full-KV attention kernel.
    out = jax.block_until_ready(multi_head_attention(params, q, k, v, n_head))
    ref = reference_mha(params, q, k, v, n_head)
    assert out.shape == (B, L, d_model)
    assert jnp.allclose(out, ref, **tol), "cross-attention mismatch vs reference"

    # 2) Self-attention fast path: fused [d_model, 3*d_model] QKV projection.
    out_sa = jax.block_until_ready(multi_head_attention(params, q, q, q, n_head))
    ref_sa = reference_mha(params, q, q, q, n_head)
    assert jnp.allclose(out_sa, ref_sa, **tol), "self-attention mismatch vs reference"

    # 3) kv-tiled online-softmax (flash) path, forced at a small length so the
    #    multi-step rescaling recurrence is exercised (grid = (B, 2, 2)).
    L2 = 256
    kq2, kk2, kv2 = jax.random.split(jax.random.PRNGKey(1), 3)
    q2 = jax.random.normal(kq2, (B, L2, d_model), jnp.float32)
    k2 = jax.random.normal(kk2, (B, L2, d_model), jnp.float32)
    v2 = jax.random.normal(kv2, (B, L2, d_model), jnp.float32)
    out_fl = jax.block_until_ready(
        multi_head_attention(params, q2, k2, v2, n_head,
                             attention_impl="flash", q_block=128, kv_block=128))
    ref_fl = reference_mha(params, q2, k2, v2, n_head)
    assert jnp.allclose(out_fl, ref_fl, **tol), "flash-attention mismatch vs reference"

    print("KERNEL_OK")
</pallas_src>

<mosaic_0001>
module attributes {stable_mosaic.version = 11 : i64} {
  func.func @_copy_probe_kernel(%arg0: i32, %arg1: memref<8x128xf32, #tpu.memory_space<vmem>>, %arg2: memref<8x128xf32, #tpu.memory_space<vmem>>) attributes {dimension_semantics = [#tpu.dimension_semantics<arbitrary>], iteration_bounds = array<i64: 2>, scalar_prefetch = 0 : i64, scratch_operands = 0 : i64, tpu.core_type = #tpu.core_type<tc>, window_params = [{pipeline_mode = #tpu.pipeline_mode<synchronous>, transform_indices = @transform_0, window_bounds = array<i64: 8, 128>}, {transform_indices = @transform_1, window_bounds = array<i64: 8, 128>}]} {
    %c0 = arith.constant 0 : index
    %c0_0 = arith.constant 0 : index
    %0 = vector.load %arg1[%c0, %c0_0] : memref<8x128xf32, #tpu.memory_space<vmem>>, vector<8x128xf32>
    %c0_1 = arith.constant 0 : index
    %c0_2 = arith.constant 0 : index
    %1 = vector.load %arg2[%c0_1, %c0_2] : memref<8x128xf32, #tpu.memory_space<vmem>>, vector<8x128xf32>
    tpu.vector_store %arg2[%c0_1, %c0_2], %0 {strides = array<i32>} : memref<8x128xf32, #tpu.memory_space<vmem>>, vector<8x128xf32>,
    return
  }
  func.func @transform_0(%arg0: i32) -> (i32, i32) {
    %c0_i32 = arith.constant 0 : i32
    %c0_i32_0 = arith.constant 0 : i32
    %c0_i32_1 = arith.constant 0 : i32
    return %c0_i32, %c0_i32_0 : i32, i32
  }
  func.func @transform_1(%arg0: i32) -> (i32, i32) {
    %c0_i32 = arith.constant 0 : i32
    %c0_i32_0 = arith.constant 0 : i32
    return %arg0, %c0_i32 : i32, i32
  }
}

module attributes {stable_mosaic.version = 11 : i64} {
  func.func @_qkv_proj_kernel(%arg0: i32, %arg1: memref<16x32xf32, #tpu.memory_space<vmem>>, %arg2: memref<16x32xf32, #tpu.memory_space<vmem>>, %arg3: memref<16x32xf32, #tpu.memory_space<vmem>>, %arg4: memref<32x32xbf16, #tpu.memory_space<vmem>>, %arg5: memref<32x32xbf16, #tpu.memory_space<vmem>>, %arg6: memref<32x32xbf16, #tpu.memory_space<vmem>>, %arg7: memref<1x32xf32, #tpu.memory_space<vmem>>, %arg8: memref<1x32xf32, #tpu.memory_space<vmem>>, %arg9: memref<1x32xf32, #tpu.memory_space<vmem>>, %arg10: memref<16x32xbf16, #tpu.memory_space<vmem>>, %arg11: memref<16x32xbf16, #tpu.memory_space<vmem>>, %arg12: memref<16x32xbf16, #tpu.memory_space<vmem>>) attributes {dimension_semantics = [#tpu.dimension_semantics<parallel>], iteration_bounds = array<i64: 1>, scalar_prefetch = 0 : i64, scratch_operands = 0 : i64, tpu.core_type = #tpu.core_type<tc>, window_params = [{transform_indices = @transform_0, window_bounds = array<i64: 16, 32>}, {transform_indices = @transform_1, window_bounds = array<i64: 16, 32>}, {transform_indices = @transform_2, window_bounds = array<i64: 16, 32>}, {pipeline_mode = #tpu.pipeline_mode<synchronous>, transform_indices = @transform_3, window_bounds = array<i64: 32, 32>}, {pipeline_mode = #tpu.pipeline_mode<synchronous>, transform_indices = @transform_4, window_bounds = array<i64: 32, 32>}, {pipeline_mode = #tpu.pipeline_mode<synchronous>, transform_indices = @transform_5, window_bounds = array<i64: 32, 32>}, {pipeline_mode = #tpu.pipeline_mode<synchronous>, transform_indices = @transform_6, window_bounds = array<i64: 1, 32>}, {pipeline_mode = #tpu.pipeline_mode<synchronous>, transform_indices = @transform_7, window_bounds = array<i64: 1, 32>}, {pipeline_mode = #tpu.pipeline_mode<synchronous>, transform_indices = @transform_8, window_bounds = array<i64: 1, 32>}, {transform_indices = @transform_9, window_bounds = array<i64: 16, 32>}, {transform_indices = @transform_10, window_bounds = array<i64: 16, 32>}, {transform_indices = @transform_11, window_bounds = array<i64: 16, 32>}]} {
    %c0 = arith.constant 0 : index
    %c0_0 = arith.constant 0 : index
    %0 = vector.load %arg1[%c0, %c0_0] : memref<16x32xf32, #tpu.memory_space<vmem>>, vector<16x32xf32>
    %1 = arith.truncf %0 : vector<16x32xf32> to vector<16x32xbf16>
    %c0_1 = arith.constant 0 : index
    %c0_2 = arith.constant 0 : index
    %2 = vector.load %arg4[%c0_1, %c0_2] : memref<32x32xbf16, #tpu.memory_space<vmem>>, vector<32x32xbf16>
    %cst = arith.constant dense<0.000000e+00> : vector<16x32xf32>
    %3 = tpu.matmul %1, %2, %cst {dimension_numbers = #tpu.dot_dimension_numbers<[1], [0], [0], [1], [0, 0, 1, 1], [], []>} : vector<16x32xbf16>, vector<32x32xbf16>, vector<16x32xf32> -> vector<16x32xf32>
    %c0_3 = arith.constant 0 : index
    %c0_4 = arith.constant 0 : index
    %4 = vector.load %arg7[%c0_3, %c0_4] : memref<1x32xf32, #tpu.memory_space<vmem>>, vector<1x32xf32>
    %5 = vector.broadcast %4 : vector<1x32xf32> to vector<16x32xf32>
    %6 = arith.addf %3, %5 : vector<16x32xf32>
    %cst_5 = arith.constant 0.353553385 : f32
    %7 = vector.broadcast %cst_5 : f32 to vector<16x32xf32>
    %8 = arith.mulf %6, %7 : vector<16x32xf32>
    %9 = arith.truncf %8 : vector<16x32xf32> to vector<16x32xbf16>
    %c0_6 = arith.constant 0 : index
    %c0_7 = arith.constant 0 : index
    %10 = vector.load %arg10[%c0_6, %c0_7] : memref<16x32xbf16, #tpu.memory_space<vmem>>, vector<16x32xbf16>
    tpu.vector_store %arg10[%c0_6, %c0_7], %9 {strides = array<i32>} : memref<16x32xbf16, #tpu.memory_space<vmem>>, vector<16x32xbf16>,
    %c0_8 = arith.constant 0 : index
    %c0_9 = arith.constant 0 : index
    %11 = vector.load %arg2[%c0_8, %c0_9] : memref<16x32xf32, #tpu.memory_space<vmem>>, vector<16x32xf32>
    %12 = arith.truncf %11 : vector<16x32xf32> to vector<16x32xbf16>
    %c0_10 = arith.constant 0 : index
    %c0_11 = arith.constant 0 : index
    %13 = vector.load %arg5[%c0_10, %c0_11] : memref<32x32xbf16, #tpu.memory_space<vmem>>, vector<32x32xbf16>
    %cst_12 = arith.constant dense<0.000000e+00> : vector<16x32xf32>
    %14 = tpu.matmul %12, %13, %cst_12 {dimension_numbers = #tpu.dot_dimension_numbers<[1], [0], [0], [1], [0, 0, 1, 1], [], []>} : vector<16x32xbf16>, vector<32x32xbf16>, vector<16x32xf32> -> vector<16x32xf32>
    %c0_13 = arith.constant 0 : index
    %c0_14 = arith.constant 0 : index
    %15 = vector.load %arg8[%c0_13, %c0_14] : memref<1x32xf32, #tpu.memory_space<vmem>>, vector<1x32xf32>
    %16 = vector.broadcast %15 : vector<1x32xf32> to vector<16x32xf32>
    %17 = arith.addf %14, %16 : vector<16x32xf32>
    %18 = arith.truncf %17 : vector<16x32xf32> to vector<16x32xbf16>
    %c0_15 = arith.constant 0 : index
    %c0_16 = arith.constant 0 : index
    %19 = vector.load %arg11[%c0_15, %c0_16] : memref<16x32xbf16, #tpu.memory_space<vmem>>, vector<16x32xbf16>
    tpu.vector_store %arg11[%c0_15, %c0_16], %18 {strides = array<i32>} : memref<16x32xbf16, #tpu.memory_space<vmem>>, vector<16x32xbf16>,
    %c0_17 = arith.constant 0 : index
    %c0_18 = arith.constant 0 : index
    %20 = vector.load %arg3[%c0_17, %c0_18] : memref<16x32xf32, #tpu.memory_space<vmem>>, vector<16x32xf32>
    %21 = arith.truncf %20 : vector<16x32xf32> to vector<16x32xbf16>
    %c0_19 = arith.constant 0 : index
    %c0_20 = arith.constant 0 : index
    %22 = vector.load %arg6[%c0_19, %c0_20] : memref<32x32xbf16, #tpu.memory_space<vmem>>, vector<32x32xbf16>
    %cst_21 = arith.constant dense<0.000000e+00> : vector<16x32xf32>
    %23 = tpu.matmul %21, %22, %cst_21 {dimension_numbers = #tpu.dot_dimension_numbers<[1], [0], [0], [1], [0, 0, 1, 1], [], []>} : vector<16x32xbf16>, vector<32x32xbf16>, vector<16x32xf32> -> vector<16x32xf32>
    %c0_22 = arith.constant 0 : index
    %c0_23 = arith.constant 0 : index
    %24 = vector.load %arg9[%c0_22, %c0_23] : memref<1x32xf32, #tpu.memory_space<vmem>>, vector<1x32xf32>
    %25 = vector.broadcast %24 : vector<1x32xf32> to vector<16x32xf32>
    %26 = arith.addf %23, %25 : vector<16x32xf32>
    %27 = arith.truncf %26 : vector<16x32xf32> to vector<16x32xbf16>
    %c0_24 = arith.constant 0 : index
    %c0_25 = arith.constant 0 : index
    %28 = vector.load %arg12[%c0_24, %c0_25] : memref<16x32xbf16, #tpu.memory_space<vmem>>, vector<16x32xbf16>
    tpu.vector_store %arg12[%c0_24, %c0_25], %27 {strides = array<i32>} : memref<16x32xbf16, #tpu.memory_space<vmem>>, vector<16x32xbf16>,
    return
  }
  func.func @transform_0(%arg0: i32) -> (i32, i32) {
    %c0_i32 = arith.constant 0 : i32
    %c0_i32_0 = arith.constant 0 : i32
    return %arg0, %c0_i32 : i32, i32
  }
  func.func @transform_1(%arg0: i32) -> (i32, i32) {
    %c0_i32 = arith.constant 0 : i32
    %c0_i32_0 = arith.constant 0 : i32
    return %arg0, %c0_i32 : i32, i32
  }
  func.func @transform_2(%arg0: i32) -> (i32, i32) {
    %c0_i32 = arith.constant 0 : i32
    %c0_i32_0 = arith.constant 0 : i32
    return %arg0, %c0_i32 : i32, i32
  }
  func.func @transform_3(%arg0: i32) -> (i32, i32) {
    %c0_i32 = arith.constant 0 : i32
    %c0_i32_0 = arith.constant 0 : i32
    %c0_i32_1 = arith.constant 0 : i32
    return %c0_i32, %c0_i32_0 : i32, i32
  }
  func.func @transform_4(%arg0: i32) -> (i32, i32) {
    %c0_i32 = arith.constant 0 : i32
    %c0_i32_0 = arith.constant 0 : i32
    %c0_i32_1 = arith.constant 0 : i32
    return %c0_i32, %c0_i32_0 : i32, i32
  }
  func.func @transform_5(%arg0: i32) -> (i32, i32) {
    %c0_i32 = arith.constant 0 : i32
    %c0_i32_0 = arith.constant 0 : i32
    %c0_i32_1 = arith.constant 0 : i32
    return %c0_i32, %c0_i32_0 : i32, i32
  }
  func.func @transform_6(%arg0: i32) -> (i32, i32) {
    %c0_i32 = arith.constant 0 : i32
    %c0_i32_0 = arith.constant 0 : i32
    %c0_i32_1 = arith.constant 0 : i32
    return %c0_i32, %c0_i32_0 : i32, i32
  }
  func.func @transform_7(%arg0: i32) -> (i32, i32) {
    %c0_i32 = arith.constant 0 : i32
    %c0_i32_0 = arith.constant 0 : i32
    %c0_i32_1 = arith.constant 0 : i32
    return %c0_i32, %c0_i32_0 : i32, i32
  }
  func.func @transform_8(%arg0: i32) -> (i32, i32) {
    %c0_i32 = arith.constant 0 : i32
    %c0_i32_0 = arith.constant 0 : i32
    %c0_i32_1 = arith.constant 0 : i32
    return %c0_i32, %c0_i32_0 : i32, i32
  }
  func.func @transform_9(%arg0: i32) -> (i32, i32) {
    %c0_i32 = arith.constant 0 : i32
    %c0_i32_0 = arith.constant 0 : i32
    return %arg0, %c0_i32 : i32, i32
  }
  func.func @transform_10(%arg0: i32) -> (i32, i32) {
    %c0_i32 = arith.constant 0 : i32
    %c0_i32_0 = arith.constant 0 : i32
    return %arg0, %c0_i32 : i32, i32
  }
  func.func @transform_11(%arg0: i32) -> (i32, i32) {
    %c0_i32 = arith.constant 0 : i32
    %c0_i32_0 = arith.constant 0 : i32
    return %arg0, %c0_i32 : i32, i32
  }
}

</mosaic_0001>

<bundles_post_ra>
// kernel: tpu_custom_call.1
= control target key start
LH: loop header
LB: loop body
LE: loop exit
PB: predicated region body
PF: predicated region fallthrough
CT: control target
= control target key end

     0   :  { %6 = vsyncpa [#allocation3], 0  ;;  %s453_s0 = inlined_call_operand.hbm [shape: f32[8,128], index: 0, kind: input, shape index: {}]   ;;  %s454_s1 = inlined_call_operand.hbm [shape: f32[16,128], index: 1, kind: output, shape index: {}]  }
   0x1   :  { %7 = vsyncpa [#allocation4], 0 }
   0x2   :  { %9 = vsyncpa [#allocation4 + $0x1], 0  ;;  %s347_s6 = smov 0   ;;  %s349_s7 = smov 0  }
   0x3   :  { %s351_s8 = smov 0   ;;  %s353_s9 = smov 0  }
   0x4 LB: > { %s368_s10 = sadd.s32 4294967295, %s333_s9   ;;  %s183_s11 = sadd.s32 4294967294, %s333_s9   ;;  %s333_s9 = sphi %s353_s9, %s462_s9   ;;  %s329_s8 = sphi %s351_s8, %s461_s8   ;;  %s325_s7 = sphi %s349_s7, %s460_s7   ;;  %s321_s6 = sphi %s347_s6, %s459_s6  }
   0x5   : > { %s372_s12 = sadd.s32 1, %s333_s9   ;;  %s43_s13 = sadd.s32 1, %s329_s8 }
   0x6   : > { %s40_s14 = ssub.s32 %s333_s9, %s372_s12  ;;  %p53_p0 = scmp.ne.s32.totalorder %s329_s8, %s325_s7 }
   0x7   : > { %p41_p1 = scmp.eq.s32.totalorder %s40_s14, 0  ;;  %p54_p2 = scmp.eq.s32.totalorder %s368_s10, 1 }
   0x8   : > { %p59_p3 = scmp.ne.s32.totalorder %s325_s7, %s321_s6  ;;  %p60_p4 = scmp.eq.s32.totalorder %s183_s11, 1 }
   0x9   : > { %s383_s15 = scalar_select %p41_p1, %s329_s8, %s43_s13  }
   0xa   : > { %p385_p5 = por %p54_p2, %p53_p0  ;;  %p389_p6 = por %p60_p4, %p59_p3 }
   0xb   : > { %p184_p7 = scmp.ge.s32.totalorder %s333_s9, 1  ;;  %p67_p8 = scmp.lt.s32.totalorder %s333_s9, 3 }
   0xc   : > { %s456_s17 = scalar_select %p389_p6, 1, 0 }
   0xd   : > { %p207_p9 = scmp.eq.s32.totalorder %s368_s10, 0  ;;  %p396_p10 = pnand %p184_p7, %p67_p8 }
   0xe   : > { %s335_s19 = smov [#allocation2]  }
   0xf   : > { %s80_s20 = sshll.u32 %s335_s19, 4  ;;  %p199_p11 = pneg %p396_p10  ;;  %s81_s20 = int_to_ptr.vmem [resolvable:$true] %s80_s20 }
  0x10   : > { %s254_s21 = scalar_lea.vmem %s81_s20, 128  ;;  %p262_p3 = scmp.lt.s32.totalorder %s81_s20, %s81_s20 }
  0x11   : > { %p200_p12 = pnand %p207_p9, %p199_p11  ;;  %p255_p0 = scmp.ne.s32.totalorder %s81_s20, %s254_s21 }
  0x12   : > { %p263_p4 = scmp.lt.s32.totalorder %s254_s21, %s254_s21 }
  0x13   : > { %p245_p13 = pneg %p200_p12 }
  0x14   : > { %p264_p6 = por %p263_p4, %p262_p3 }
  0x15   : > { %p257_p1 = pnand %p255_p0, %p245_p13 }
  0x17   : > { %p258_p2 = pneg %p257_p1 }
  0x19   : > { %p265_p7 = pnand %p264_p6, %p258_p2 }
  0x1b   : > { %268 = shalt.err (!%p265_p7)
}
  0x1c   : > { %202 = dma.hbm_to_vmem [thread:$0]  (!%p200_p12), %s453_s0, 128, %s81_s20, [#allocation3]  }
  0x1d   : > { %93 = sbr.rel (%p396_p10) target bundleno = 60 (0x3c), region = 24 }
  0x22   : > { %312 = dma.done.wait (%p207_p9), [#allocation3], 128  }
  0x23   : > { %314 = vsyncadd (%p207_p9), [#allocation3], 4294967168  ;;  %s105_s24 = sand.u32 1, %s325_s7   ;;  %s190_s28 = sshll.u32 %s368_s10, 7  ;;  %v108_v0 = vld [vmem:[#allocation2] sm:$0xff] }
  0x24   : > { %s188_s25 = sshll.u32 %s105_s24, 3  ;;  %s122_s2 = scalar_lea.hbm %s454_s1, %s190_s28 }
  0x25   : > { %s107_s26 = scalar_lea.vmem [#allocation5], %s188_s25  ;;  %s111_s3 = scalar_lea.sflag [#allocation4], %s105_s24 }
  0x26   : > { %s124_s27 = sshll.u32 %s107_s26, 4  ;;  %109 = vst [vmem:[%s107_s26] sm:$0xff] %v108_v0  ;;  %s336_s5 = smov [#allocation5]   ;;  %s415_s27 = int_to_ptr.vmem [resolvable:$true] %s124_s27 }
  0x27   : > { %s269_s4 = scalar_lea.vmem %s415_s27, 128  ;;  %s273_s11 = sshll.u32 %s336_s5, 4  ;;  %s274_s11 = int_to_ptr.vmem [resolvable:$false] %s273_s11 }
  0x28   : > { %p270_p6 = scmp.ne.s32.totalorder %s415_s27, %s269_s4  ;;  %s275_s10 = scalar_lea.vmem %s274_s11, 256 }
  0x29   : > { %p276_p10 = scmp.lt.s32.totalorder %s415_s27, %s274_s11  ;;  %p277_p11 = scmp.lt.s32.totalorder %s275_s10, %s269_s4 }
  0x2a   : > { %p271_p8 = pnand %p270_p6, %p385_p5 }
  0x2b   : > { %p278_p12 = por %p277_p11, %p276_p10 }
  0x2c   : > { %p272_p9 = pneg %p271_p8 }
  0x2e   : > { %p279_p13 = pnand %p278_p12, %p272_p9 }
  0x30   : > { %282 = shalt.err (!%p279_p13)
}
  0x31   : > { %s283_s13 = scalar_lea.hbm %s122_s2, 128  ;;  %s287_s19 = scalar_lea.hbm %s454_s1, 256 }
  0x32   : > { %p284_p0 = scmp.ne.s32.totalorder %s122_s2, %s283_s13  ;;  %p288_p3 = scmp.lt.s32.totalorder %s122_s2, %s454_s1 }
  0x33   : > { %p289_p4 = scmp.lt.s32.totalorder %s287_s19, %s283_s13 }
  0x34   : > { %p285_p1 = pnand %p284_p0, %p385_p5 }
  0x35   : > { %p290_p7 = por %p289_p4, %p288_p3 }
  0x36   : > { %p286_p2 = pneg %p285_p1 }
  0x38   : > { %p291_p6 = pnand %p290_p7, %p286_p2 }
  0x3a   : > { %294 = shalt.err (!%p291_p6)
}
  0x3b   : > { %197 = dma.vmem_to_hbm [thread:$0]  (%p385_p5), %s415_s27, 128, %s122_s2, %s111_s3  }
  0x3c PF: > { %p209_p8 = scmp.ge.s32.totalorder %s333_s9, 2  ;;  %s136_s22 = sand.u32 1, %s321_s6  }
  0x3d   : > { %p458_p9 = scmp.ne.s32.totalorder %s456_s17, 0  ;;  %s137_s23 = scalar_lea.sflag [#allocation4], %s136_s22 }
  0x3f   : > { %p204_p10 = pnand %p209_p8, %p458_p9 }
  0x41   : > { %p205_p11 = pneg %p204_p10 }
  0x43   : > { %316 = dma.done.wait (%p205_p11), %s137_s23, 128  }
  0x44   : > { %318 = vsyncadd (%p205_p11), %s137_s23, 4294967168  ;;  %p12_p12 = scmp.ge.s32.totalorder %s372_s12, 4   ;;  %s459_s6 = smov %s325_s7 }
  0x45   : > { %s460_s7 = smov %s329_s8  ;;  %s461_s8 = smov %s383_s15 }
  0x46   : > { %s462_s9 = smov %s372_s12  ;;  %14 = sbr.rel (!%p12_p12) target bundleno = 4 (0x4), region = 61 }
  0x4b   :  { %142 = vsyncpa [#allocation3], 1 }
  0x4c   :  { %144 = vsyncpa [#allocation3 + $0x1], 1 }
  0x4d   :  { %145 = vsyncpa [#allocation4], 1 }
  0x4e   :  { %147 = vsyncpa [#allocation4 + $0x1], 1 }

// kernel: tpu_custom_call.1
= control target key start
LH: loop header
LB: loop body
LE: loop exit
PB: predicated region body
PF: predicated region fallthrough
CT: control target
= control target key end

     0   :  { %17 = vsyncpa [#allocation3], 0  ;;  %s832_s0 = inlined_call_operand.hbm [shape: f32[16,32], index: 0, kind: input, shape index: {}]   ;;  %s833_s1 = inlined_call_operand.hbm [shape: f32[16,32], index: 1, kind: input, shape index: {}]   ;;  %s834_s2 = inlined_call_operand.hbm [shape: f32[16,32], index: 2, kind: input, shape index: {}]   ;;  %s835_s3 = inlined_call_operand.hbm [shape: bf16[32,32], index: 3, kind: input, shape index: {}]   ;;  %s836_s4 = inlined_call_operand.hbm [shape: bf16[32,32], index: 4, kind: input, shape index: {}]   ;;  %s837_s5 = inlined_call_operand.hbm [shape: bf16[32,32], index: 5, kind: input, shape index: {}]   ;;  %s838_s6 = inlined_call_operand.vmem [shape: f32[1,32], index: 6, kind: input, shape index: {}]   ;;  %s839_s7 = inlined_call_operand.vmem [shape: f32[1,32], index: 7, kind: input, shape index: {}]   ;;  %s840_s8 = inlined_call_operand.vmem [shape: f32[1,32], index: 8, kind: input, shape index: {}]   ;;  %s841_s9 = inlined_call_operand.hbm [shape: bf16[16,32], index: 9, kind: output, shape index: {0}]   ;;  %s842_s10 = inlined_call_operand.hbm [shape: bf16[16,32], index: 10, kind: output, shape index: {1}]   ;;  %s843_s11 = inlined_call_operand.hbm [shape: bf16[16,32], index: 11, kind: output, shape index: {2}]  }
   0x1   :  { %18 = vsyncpa [#allocation6], 0 }
   0x2   :  { %19 = vsyncpa [#allocation9], 0 }
   0x3   :  { %20 = vsyncpa [#allocation12], 0 }
   0x4   :  { %21 = vsyncpa [#allocation4], 0 }
   0x5   :  { %22 = vsyncpa [#allocation15], 0  ;;  %s685_s17 = smov [#allocation5]   ;;  %s686_s19 = smov [#allocation8]  }
   0x6   :  { %s40_s18 = sshll.u32 %s685_s17, 4  ;;  %s64_s20 = sshll.u32 %s686_s19, 4  ;;  %s41_s18 = int_to_ptr.vmem [resolvable:$true] %s40_s18  ;;  %s65_s20 = int_to_ptr.vmem [resolvable:$true] %s64_s20 }
   0x7   :  { %s501_s21 = scalar_lea.vmem %s41_s18, 256  ;;  %p506_p1 = scmp.lt.s32.totalorder %s41_s18, %s41_s18 }
   0x8   :  { %p502_p0 = scmp.ne.s32.totalorder %s41_s18, %s501_s21  ;;  %p507_p2 = scmp.lt.s32.totalorder %s501_s21, %s501_s21 }
   0xa   :  { %p508_p3 = por %p507_p2, %p506_p1 }
   0xc   :  { %p509_p4 = pnand %p508_p3, %p502_p0 }
   0xe   :  { %512 = shalt.err (!%p509_p4)
}
   0xf   :  { %s687_s22 = smov 128   ;;  %s688_s23 = smov 8  }
  0x10   :  { %46 = dma.hbm_to_vmem [thread:$0]  %s833_s1, 256, %s41_s18, [#allocation6], %s687_s22, %s687_s22, %s688_s23  }
  0x11   :  { %s521_s26 = scalar_lea.vmem %s65_s20, 256  ;;  %p526_p6 = scmp.lt.s32.totalorder %s65_s20, %s65_s20 }
  0x12   :  { %p522_p5 = scmp.ne.s32.totalorder %s65_s20, %s521_s26  ;;  %p527_p7 = scmp.lt.s32.totalorder %s521_s26, %s521_s26 }
  0x14   :  { %p528_p8 = por %p527_p7, %p526_p6 }
  0x16   :  { %p529_p9 = pnand %p528_p8, %p522_p5 }
  0x18   :  { %532 = shalt.err (!%p529_p9)
}
  0x19   :  { %s689_s27 = smov 64   ;;  %s690_s28 = smov 4  }
  0x1a   :  { %70 = dma.hbm_to_vmem [thread:$0]  %s835_s3, 256, %s65_s20, [#allocation9], %s689_s27, %s689_s27, %s690_s28  }
  0x1b   :  { %s691_s12 = smov [#allocation2]   ;;  %s692_s14 = smov [#allocation7]  }
  0x1c   :  { %s28_s13 = sshll.u32 %s691_s12, 4  ;;  %s52_s1 = sshll.u32 %s692_s14, 4  ;;  %s29_s13 = int_to_ptr.vmem [resolvable:$true] %s28_s13  ;;  %s53_s1 = int_to_ptr.vmem [resolvable:$true] %s52_s1 }
  0x1d   :  { %s541_s15 = scalar_lea.vmem %s29_s13, 256  ;;  %p546_p11 = scmp.lt.s32.totalorder %s29_s13, %s29_s13 }
  0x1e   :  { %p542_p10 = scmp.ne.s32.totalorder %s29_s13, %s541_s15  ;;  %p547_p12 = scmp.lt.s32.totalorder %s541_s15, %s541_s15 }
  0x20   :  { %p548_p13 = por %p547_p12, %p546_p11 }
  0x22   :  { %p549_p0 = pnand %p548_p13, %p542_p10 }
  0x24   :  { %552 = shalt.err (!%p549_p0)
}
  0x25   :  { %34 = dma.hbm_to_vmem [thread:$0]  %s832_s0, 256, %s29_s13, [#allocation3], %s687_s22, %s687_s22, %s688_s23  }
  0x26   :  { %s561_s3 = scalar_lea.vmem %s53_s1, 256  ;;  %p566_p2 = scmp.lt.s32.totalorder %s53_s1, %s53_s1 }
  0x27   :  { %p562_p1 = scmp.ne.s32.totalorder %s53_s1, %s561_s3  ;;  %p567_p3 = scmp.lt.s32.totalorder %s561_s3, %s561_s3 }
  0x29   :  { %p568_p4 = por %p567_p3, %p566_p2 }
  0x2b   :  { %p569_p5 = pnand %p568_p4, %p562_p1 }
  0x2d   :  { %572 = shalt.err (!%p569_p5)
}
  0x2e   :  { %58 = dma.hbm_to_vmem [thread:$0]  %s834_s2, 256, %s53_s1, [#allocation6], %s687_s22, %s687_s22, %s688_s23  }
  0x2f   :  { %s693_s20 = smov [#allocation10]   ;;  %s694_s24 = smov [#allocation11]  }
  0x30   :  { %s76_s21 = sshll.u32 %s693_s20, 4  ;;  %s88_s25 = sshll.u32 %s694_s24, 4  ;;  %s77_s21 = int_to_ptr.vmem [resolvable:$true] %s76_s21  ;;  %s89_s25 = int_to_ptr.vmem [resolvable:$true] %s88_s25 }
  0x31   :  { %s581_s0 = scalar_lea.vmem %s77_s21, 256  ;;  %p586_p7 = scmp.lt.s32.totalorder %s77_s21, %s77_s21 }
  0x32   :  { %p582_p6 = scmp.ne.s32.totalorder %s77_s21, %s581_s0  ;;  %p587_p8 = scmp.lt.s32.totalorder %s581_s0, %s581_s0 }
  0x34   :  { %p588_p9 = por %p587_p8, %p586_p7 }
  0x36   :  { %p589_p10 = pnand %p588_p9, %p582_p6 }
  0x38   :  { %592 = shalt.err (!%p589_p10)
}
  0x39   :  { %82 = dma.hbm_to_vmem [thread:$0]  %s836_s4, 256, %s77_s21, [#allocation9], %s689_s27, %s689_s27, %s690_s28  }
  0x3a   :  { %s601_s2 = scalar_lea.vmem %s89_s25, 256  ;;  %p606_p12 = scmp.lt.s32.totalorder %s89_s25, %s89_s25 }
  0x3b   :  { %p602_p11 = scmp.ne.s32.totalorder %s89_s25, %s601_s2  ;;  %p607_p13 = scmp.lt.s32.totalorder %s601_s2, %s601_s2 }
  0x3d   :  { %p608_p0 = por %p607_p13, %p606_p12 }
  0x3f   :  { %p609_p1 = pnand %p608_p0, %p602_p11 }
  0x41   :  { %612 = shalt.err (!%p609_p1)
}
  0x42   :  { %94 = dma.hbm_to_vmem [thread:$0]  %s837_s5, 256, %s89_s25, [#allocation12], %s689_s27, %s689_s27, %s690_s28  }
  0x43   :  { %673 = dma.done.wait [#allocation3], 256  }
  0x44   :  { %674 = vsyncadd [#allocation3], 4294967040 }
  0x45   :  { %675 = dma.done.wait [#allocation6], 512  }
  0x46   :  { %676 = vsyncadd [#allocation6], 4294966784 }
  0x47   :  { %677 = dma.done.wait [#allocation9], 512  }
  0x48   :  { %678 = vsyncadd [#allocation9], 4294966784 }
  0x49   :  { %679 = dma.done.wait [#allocation12], 256  }
  0x4a   :  { %680 = vsyncadd [#allocation12], 4294967040  ;;  %v695_v0 = vmov 0.0   ;;  %vm696_vm0 = vmmov 0   ;;  %v487_v1 = vld [vmem:[#allocation8 + $0x8] sm:$0xff]   ;;  %v488_v2 = vld [vmem:[#allocation10 + $0x8] sm:$0xff]  }
  0x4b   :  { %448 = vmatprep.subr.bf16.mxu0 %v695_v0  ;;  %456 = vmatprep.subr.bf16.mxu1 %v695_v0  ;;  %v489_v3 = vld [vmem:[#allocation8] sm:$0xff]   ;;  %v490_v4 = vld [vmem:[#allocation10] sm:$0xff]   ;;  %v121_v6 = vld [vmem:[#allocation2 + $0x8] sm:$0xff]  ;;  %vm146_vm1 = vcmask 261120   ;;  %vm201_vm2 = vcmask 257024   ;;  %s697_s13 = smov [#allocation14]  }
  0x4c   :  { %452 = vmatprep.mubr.msk.bf16.mxu0 %vm696_vm0, %v695_v0  ;;  %460 = vmatprep.mubr.msk.bf16.mxu1 %vm696_vm0, %v695_v0  ;;  %v120_v5 = vld [vmem:[#allocation2] sm:$0xff]  ;;  %v491_v8 = vld [vmem:[#allocation11 + $0x8] sm:$0xff]   ;;  %v204_v9 = vld [vmem:[#allocation5] sm:$0xff]  ;;  %s381_s14 = sshll.u32 %s697_s13, 4  ;;  %s699_s16 = smov [#allocation16]   ;;  %s382_s14 = int_to_ptr.vmem [resolvable:$true] %s381_s14 }
  0x4d   :  { %449 = vmatpush3.bf16.msra.mxu0 %v487_v1  ;;  %457 = vmatpush3.bf16.msra.mxu1 %v488_v2  ;;  %v122_v7 = vpack.c.bf16 %v121_v6, %v120_v5  ;;  %v205_v10 = vld [vmem:[#allocation5 + $0x8] sm:$0xff]  ;;  %v492_v12 = vld [vmem:[#allocation11] sm:$0xff]   ;;  %v284_v13 = vld [vmem:[#allocation7] sm:$0xff]  ;;  %s393_s17 = sshll.u32 %s699_s16, 4  ;;  %p618_p3 = scmp.lt.s32.totalorder %s382_s14, %s382_s14  ;;  %s394_s17 = int_to_ptr.vmem [resolvable:$true] %s393_s17 }
  0x4e   :  { %450 = vmatprep.subr.bf16.mxu0 %v695_v0  ;;  %458 = vmatprep.subr.bf16.mxu1 %v695_v0  ;;  %v206_v11 = vpack.c.bf16 %v205_v10, %v204_v9  ;;  %v285_v14 = vld [vmem:[#allocation7 + $0x8] sm:$0xff]  ;;  %v415_v16 = vld [vmem:[%s838_s6] ss:$0 sm:$0xff] }
  0x4f   :  { %v286_v15 = vpack.c.bf16 %v285_v14, %v284_v13  ;;  %v421_v17 = vld [vmem:[%s839_s7] ss:$0 sm:$0xff]  ;;  %s698_s7 = smov [#allocation13]  }
  0x50   :  { %v427_v32 = vld [vmem:[%s840_s8] ss:$0 sm:$0xff]  ;;  %s369_s15 = sshll.u32 %s698_s7, 4  ;;  %s613_s8 = scalar_lea.vmem %s382_s14, 128  ;;  %s370_s15 = int_to_ptr.vmem [resolvable:$true] %s369_s15 }
  0x51   :  { %451 = vmatpush3.bf16.msra.mxu0 %v489_v3  ;;  %459 = vmatpush3.bf16.msra.mxu1 %v490_v4  ;;  %p614_p2 = scmp.ne.s32.totalorder %s382_s14, %s613_s8  ;;  %p619_p4 = scmp.lt.s32.totalorder %s613_s8, %s613_s8 }
  0x52   :  { %464 = vmatprep.subr.bf16.mxu0 %v695_v0 }
  0x53   :  { %p620_p5 = por %p619_p4, %p618_p3 }
  0x54   :  { %453 = vmatmul.mubr.msk.bf16.vlgmr.msra.gmra.mxu0 %vm146_vm1, %v122_v7  ;;  %461 = vmatmul.mubr.msk.bf16.vlgmr.msra.gmra.mxu1 %vm146_vm1, %v206_v11 }
  0x55   :  { %465 = vmatpush3.bf16.msra.mxu0 %v491_v8  ;;  %468 = vmatprep.mubr.msk.bf16.mxu0 %vm696_vm0, %v695_v0  ;;  %p621_p6 = pnand %p620_p5, %p614_p2 }
  0x56   :  { %466 = vmatprep.subr.bf16.mxu0 %v695_v0 }
  0x59   :  { %467 = vmatpush3.bf16.msra.mxu0 %v492_v12 }
  0x5c   :  { %469 = vmatmul.mubr.msk.bf16.vlgmr.msra.gmra.mxu0 %vm146_vm1, %v286_v15 }
 0x114   :  { %v184_v18 = vpop.f32.mrf.mxu0  ;;  %v267_v20 = vpop.f32.mrf.mxu1 }
 0x115   :  { %v185_v19 = vadd.f32 %v415_v16, %v184_v18  ;;  %v268_v22 = vadd.f32 %v421_v17, %v267_v20 }
 0x116   :  { %v454_v21 = vpop.f32.mrf.mxu0  ;;  %v462_v24 = vpop.f32.mrf.mxu1 }
 0x117   :  { %v191_v23 = vmul.f32 0.35355338, %v185_v19  ;;  %v435_v25 = vpack.c.bf16 %v268_v22, %v268_v22 }
 0x118   :  { %v187_v26 = vpop.f32.mrf.mxu0  ;;  %v270_v29 = vpop.f32.mrf.mxu1 }
 0x119   :  { %v433_v27 = vpack.c.bf16 %v191_v23, %v191_v23  ;;  %v188_v28 = vadd.f32 %v415_v16, %v187_v26  ;;  %v271_v31 = vadd.f32 %v421_v17, %v270_v29  ;;  %282 = vst.msk [vmem:[#allocation14] sm:$0xf] %vm201_vm2, %v435_v25 }
 0x11a   :  { %v455_v30 = vpop.f32.mrf.mxu0  ;;  %v463_v34 = vpop.f32.mrf.mxu1 }
 0x11b   :  { %v192_v33 = vmul.f32 0.35355338, %v188_v28  ;;  %202 = vst.msk [vmem:[#allocation13] sm:$0xf] %vm201_vm2, %v433_v27  ;;  %v436_v35 = vpack.c.bf16 %v271_v31, %v271_v31 }
 0x11c   :  { %v347_v36 = vpop.f32.mrf.mxu0 }
 0x11d   :  { %v434_v37 = vpack.c.bf16 %v192_v33, %v192_v33  ;;  %v348_v38 = vadd.f32 %v427_v32, %v347_v36  ;;  %283 = vst.msk [vmem:[#allocation14 + $0x4] sm:$0xf] %vm201_vm2, %v436_v35 }
 0x11e   :  { %v470_v39 = vpop.f32.mrf.mxu0 }
 0x11f   :  { %v437_v40 = vpack.c.bf16 %v348_v38, %v348_v38  ;;  %203 = vst.msk [vmem:[#allocation13 + $0x4] sm:$0xf] %vm201_vm2, %v434_v37 }
 0x120   :  { %624 = shalt.err (!%p621_p6)
}
 0x121   :  { %387 = dma.vmem_to_hbm [thread:$0]  %s382_s14, 128, %s842_s10, [#allocation15], %s689_s27, %s689_s27, %s690_s28   ;;  %v350_v41 = vpop.f32.mrf.mxu0 }
 0x122   :  { %s633_s19 = scalar_lea.vmem %s370_s15, 128  ;;  %p638_p8 = scmp.lt.s32.totalorder %s370_s15, %s370_s15 }
 0x123   :  { %p634_p7 = scmp.ne.s32.totalorder %s370_s15, %s633_s19  ;;  %p639_p9 = scmp.lt.s32.totalorder %s633_s19, %s633_s19 }
 0x125   :  { %p640_p10 = por %p639_p9, %p638_p8 }
 0x127   :  { %p641_p11 = pnand %p640_p10, %p634_p7 }
 0x129   :  { %644 = shalt.err (!%p641_p11)
}
 0x12a   :  { %375 = dma.vmem_to_hbm [thread:$0]  %s370_s15, 128, %s841_s9, [#allocation4], %s689_s27, %s689_s27, %s690_s28   ;;  %362 = vst.msk [vmem:[#allocation16] sm:$0xf] %vm201_vm2, %v437_v40  ;;  %v351_v42 = vadd.f32 %v427_v32, %v350_v41  ;;  %v471_v43 = vpop.f32.mrf.mxu0 }
 0x12b   :  { %s653_s10 = scalar_lea.vmem %s394_s17, 128  ;;  %p658_p13 = scmp.lt.s32.totalorder %s394_s17, %s394_s17 }
 0x12c   :  { %v438_v44 = vpack.c.bf16 %v351_v42, %v351_v42  ;;  %p654_p12 = scmp.ne.s32.totalorder %s394_s17, %s653_s10  ;;  %p659_p0 = scmp.lt.s32.totalorder %s653_s10, %s653_s10 }
 0x12e   :  { %363 = vst.msk [vmem:[#allocation16 + $0x4] sm:$0xf] %vm201_vm2, %v438_v44  ;;  %p660_p1 = por %p659_p0, %p658_p13 }
 0x130   :  { %p661_p2 = pnand %p660_p1, %p654_p12 }
 0x132   :  { %664 = shalt.err (!%p661_p2)
}
 0x133   :  { %399 = dma.vmem_to_hbm [thread:$0]  %s394_s17, 128, %s843_s11, [#allocation15], %s689_s27, %s689_s27, %s690_s28  }
 0x134   :  { %681 = dma.done.wait [#allocation4], 128  }
 0x135   :  { %682 = vsyncadd [#allocation4], 4294967168 }
 0x136   :  { %683 = dma.done.wait [#allocation15], 256  }
 0x137   :  { %684 = vsyncadd [#allocation15], 4294967040 }
 0x138   :  { %409 = vsyncpa [#allocation3], 1 }
 0x139   :  { %410 = vsyncpa [#allocation6], 1 }
 0x13a   :  { %411 = vsyncpa [#allocation9], 1 }
 0x13b   :  { %412 = vsyncpa [#allocation12], 1 }
 0x13c   :  { %413 = vsyncpa [#allocation4], 1 }
 0x13d   :  { %414 = vsyncpa [#allocation15], 1 }

</bundles_post_ra>
